<compile_context>
chip_gen: v7x
topology: tpu7x:2x2x1
jax: 0.10.0
libtpu: 0.0.40
codegen_flags: <defaults>
</compile_context>

<pallas_src>
import functools

import jax
import jax.numpy as jnp
from jax.experimental import pallas as pl
from jax.experimental.pallas import tpu as pltpu


def _psi_kernel(sel_ref, x_ref, o_ref, *, block_size):
    # sel_ref: (b, W, Wo)       -> one-hot column-gather matrices, resident in VMEM.
    # x_ref:   (1, Tm, b, W)    -> Tm fused rows m=(c, hi) of the NCHW input; W still
    #                              bw-interleaved; bh selects the sub-row.
    # o_ref:   (1, b, b, Tm, Wo)-> output slots (bh, bw) for the same Tm rows, columns
    #                              de-interleaved (lane dim = Wo).
    b = block_size
    for bh in range(b):
        rows = x_ref[0, :, bh, :]                       # (Tm, W) rectangular load
        for bw in range(b):
            # Exact stride-b column gather on the MXU: piece[m, wi] = rows[m, wi*b + bw].
            piece = jnp.dot(rows, sel_ref[bw],
                            precision=jax.lax.Precision.HIGHEST,
                            preferred_element_type=jnp.float32)
            o_ref[0, bh, bw, :, :] = piece.astype(o_ref.dtype)


def _make_selectors(b, w, dtype):
    """sel[bw, w, wi] = 1  iff  w == wi*b + bw   (one-hot column-gather matrices)."""
    wo = w // b
    w_idx = jnp.arange(w, dtype=jnp.int32)[None, :, None]
    wi_idx = jnp.arange(wo, dtype=jnp.int32)[None, None, :]
    bw_idx = jnp.arange(b, dtype=jnp.int32)[:, None, None]
    return (w_idx == wi_idx * b + bw_idx).astype(dtype)


def _choose_row_tile(m, row_bytes, target_bytes=2 << 20):
    """Largest Tm dividing M with Tm % 8 == 0 and Tm*row_bytes <= target, else M itself."""
    if m * row_bytes <= target_bytes:
        return m
    best = 0
    t = 8
    while t < m and t * row_bytes <= target_bytes:
        if m % t == 0:
            best = t
        t += 8
    return best if best > 0 else m


def psi_forward(x, block_size):
    """x: (B, C, H, W) float array (NCHW). Returns (B, C*b*b, H//b, W//b)."""
    B, C, H, W = x.shape
    b = block_size
    assert H % b == 0 and W % b == 0, "spatial dims must be divisible by block_size"
    Ho, Wo = H // b, W // b
    M = C * Ho

    itemsize = jnp.dtype(x.dtype).itemsize
    # Approximate VMEM bytes per fused row m (input plane sublane-padded to 8,
    # output rows lane-padded to 128); the ~2 MiB tile target leaves ample headroom for
    # double-buffering of input + output blocks inside the 32 MiB scoped-VMEM limit.
    row_bytes = (max(b, 8) * W + b * b * max(Wo, 128)) * itemsize
    Tm = _choose_row_tile(M, row_bytes)

    # One-hot selectors: tiny constant input, fetched once (constant index_map).
    sel = _make_selectors(b, W, x.dtype)

    # Free (bitcast) view of the NCHW input: (B, C, H, W) -> (B, C*Ho, b, W).
    x_view = x.reshape(B, M, b, W)

    total_bytes = (x.size + B * b * b * M * Wo + sel.size) * itemsize
    cost = pl.CostEstimate(
        flops=2 * B * M * b * b * W * Wo,
        transcendentals=0,
        bytes_accessed=int(total_bytes),
    )

    out5 = pl.pallas_call(
        functools.partial(_psi_kernel, block_size=b),
        out_shape=jax.ShapeDtypeStruct((B, b, b, M, Wo), x.dtype),
        grid_spec=pltpu.PrefetchScalarGridSpec(
            num_scalar_prefetch=0,
            grid=(B, M // Tm),
            in_specs=[
                pl.BlockSpec((b, W, Wo), lambda n, mi: (0, 0, 0)),        # selectors (resident)
                pl.BlockSpec((1, Tm, b, W), lambda n, mi: (n, mi, 0, 0)),  # input rows
            ],
            out_specs=pl.BlockSpec((1, b, b, Tm, Wo), lambda n, mi: (n, 0, 0, mi, 0)),
        ),
        compiler_params=pltpu.CompilerParams(
            dimension_semantics=("parallel", "parallel"),
            vmem_limit_bytes=32 << 20,
        ),
        cost_estimate=cost,
    )(sel, x_view)

    # Free (bitcast) view of the output: (B, b, b, C*Ho, Wo) -> (B, b*b*C, Ho, Wo).
    # Depth index = bh*(b*C) + bw*C + c, matching the PyTorch module exactly.
    return out5.reshape(B, b * b * C, Ho, Wo)


def psi_ref(x, b):
    """Pure-JAX reference reproducing the PyTorch forward."""
    B, C, H, W = x.shape
    y = x.reshape(B, C, H // b, b, W // b, b)
    y = jnp.transpose(y, (0, 3, 5, 1, 2, 4))            # (B, bh, bw, C, H//b, W//b)
    return y.reshape(B, b * b * C, H // b, W // b)


if __name__ == "__main__":
    key = jax.random.PRNGKey(0)
    # Small shapes consistent with the module: batch=2, channels=4, spatial=16x16.
    x = jax.random.normal(key, (2, 4, 16, 16), dtype=jnp.float32)

    psi_jit = jax.jit(psi_forward, static_argnums=1)

    for block_size in (2, 4):
        out = jax.block_until_ready(psi_jit(x, block_size))
        ref = psi_ref(x, block_size)
        assert out.shape == ref.shape, (out.shape, ref.shape)
        assert bool(jnp.allclose(out, ref, atol=0.0, rtol=0.0)), (
            f"mismatch for block_size={block_size}")

    print("KERNEL_OK")
</pallas_src>

<mosaic_0001>
module attributes {stable_mosaic.version = 11 : i64} {
  func.func @_psi_kernel(%arg0: i32, %arg1: i32, %arg2: memref<2x16x8xf32, #tpu.memory_space<vmem>>, %arg3: memref<1x32x2x16xf32, #tpu.memory_space<vmem>>, %arg4: memref<1x2x2x32x8xf32, #tpu.memory_space<vmem>>) attributes {dimension_semantics = [#tpu.dimension_semantics<parallel>, #tpu.dimension_semantics<parallel>], iteration_bounds = array<i64: 2, 1>, scalar_prefetch = 0 : i64, scratch_operands = 0 : i64, tpu.core_type = #tpu.core_type<tc>, window_params = [{pipeline_mode = #tpu.pipeline_mode<synchronous>, transform_indices = @transform_0, window_bounds = array<i64: 2, 16, 8>}, {transform_indices = @transform_1, window_bounds = array<i64: 1, 32, 2, 16>}, {transform_indices = @transform_2, window_bounds = array<i64: 1, 2, 2, 32, 8>}]} {
    %c0 = arith.constant 0 : index
    %c0_0 = arith.constant 0 : index
    %c0_1 = arith.constant 0 : index
    %c0_2 = arith.constant 0 : index
    %0 = vector.load %arg3[%c0, %c0_0, %c0_1, %c0_2] : memref<1x32x2x16xf32, #tpu.memory_space<vmem>>, vector<1x32x1x16xf32>
    %1 = vector.shape_cast %0 : vector<1x32x1x16xf32> to vector<32x16xf32>
    %c0_3 = arith.constant 0 : index
    %c0_4 = arith.constant 0 : index
    %c0_5 = arith.constant 0 : index
    %2 = vector.load %arg2[%c0_3, %c0_4, %c0_5] : memref<2x16x8xf32, #tpu.memory_space<vmem>>, vector<1x16x8xf32>
    %3 = vector.shape_cast %2 : vector<1x16x8xf32> to vector<16x8xf32>
    %cst = arith.constant dense<0.000000e+00> : vector<32x8xf32>
    %4 = tpu.matmul %1, %3, %cst {dimension_numbers = #tpu.dot_dimension_numbers<[1], [0], [0], [1], [0, 0, 1, 1], [], []>, precision = #tpu.contract_precision<fp32>} : vector<32x16xf32>, vector<16x8xf32>, vector<32x8xf32> -> vector<32x8xf32>
    %c0_6 = arith.constant 0 : index
    %c0_7 = arith.constant 0 : index
    %c0_8 = arith.constant 0 : index
    %c0_9 = arith.constant 0 : index
    %c0_10 = arith.constant 0 : index
    %5 = vector.load %arg4[%c0_6, %c0_7, %c0_8, %c0_9, %c0_10] : memref<1x2x2x32x8xf32, #tpu.memory_space<vmem>>, vector<1x1x1x32x8xf32>
    %6 = vector.shape_cast %5 : vector<1x1x1x32x8xf32> to vector<32x8xf32>
    %7 = vector.shape_cast %4 : vector<32x8xf32> to vector<1x1x1x32x8xf32>
    tpu.vector_store %arg4[%c0_6, %c0_7, %c0_8, %c0_9, %c0_10], %7 {strides = array<i32>} : memref<1x2x2x32x8xf32, #tpu.memory_space<vmem>>, vector<1x1x1x32x8xf32>,
    %c1 = arith.constant 1 : index
    %c0_11 = arith.constant 0 : index
    %c0_12 = arith.constant 0 : index
    %8 = vector.load %arg2[%c1, %c0_11, %c0_12] : memref<2x16x8xf32, #tpu.memory_space<vmem>>, vector<1x16x8xf32>
    %9 = vector.shape_cast %8 : vector<1x16x8xf32> to vector<16x8xf32>
    %cst_13 = arith.constant dense<0.000000e+00> : vector<32x8xf32>
    %10 = tpu.matmul %1, %9, %cst_13 {dimension_numbers = #tpu.dot_dimension_numbers<[1], [0], [0], [1], [0, 0, 1, 1], [], []>, precision = #tpu.contract_precision<fp32>} : vector<32x16xf32>, vector<16x8xf32>, vector<32x8xf32> -> vector<32x8xf32>
    %c0_14 = arith.constant 0 : index
    %c0_15 = arith.constant 0 : index
    %c1_16 = arith.constant 1 : index
    %c0_17 = arith.constant 0 : index
    %c0_18 = arith.constant 0 : index
    %11 = vector.load %arg4[%c0_14, %c0_15, %c1_16, %c0_17, %c0_18] : memref<1x2x2x32x8xf32, #tpu.memory_space<vmem>>, vector<1x1x1x32x8xf32>
    %12 = vector.shape_cast %11 : vector<1x1x1x32x8xf32> to vector<32x8xf32>
    %13 = vector.shape_cast %10 : vector<32x8xf32> to vector<1x1x1x32x8xf32>
    tpu.vector_store %arg4[%c0_14, %c0_15, %c1_16, %c0_17, %c0_18], %13 {strides = array<i32>} : memref<1x2x2x32x8xf32, #tpu.memory_space<vmem>>, vector<1x1x1x32x8xf32>,
    %c0_19 = arith.constant 0 : index
    %c0_20 = arith.constant 0 : index
    %c1_21 = arith.constant 1 : index
    %c0_22 = arith.constant 0 : index
    %14 = vector.load %arg3[%c0_19, %c0_20, %c1_21, %c0_22] : memref<1x32x2x16xf32, #tpu.memory_space<vmem>>, vector<1x32x1x16xf32>
    %15 = vector.shape_cast %14 : vector<1x32x1x16xf32> to vector<32x16xf32>
    %c0_23 = arith.constant 0 : index
    %c0_24 = arith.constant 0 : index
    %c0_25 = arith.constant 0 : index
    %16 = vector.load %arg2[%c0_23, %c0_24, %c0_25] : memref<2x16x8xf32, #tpu.memory_space<vmem>>, vector<1x16x8xf32>
    %17 = vector.shape_cast %16 : vector<1x16x8xf32> to vector<16x8xf32>
    %cst_26 = arith.constant dense<0.000000e+00> : vector<32x8xf32>
    %18 = tpu.matmul %15, %17, %cst_26 {dimension_numbers = #tpu.dot_dimension_numbers<[1], [0], [0], [1], [0, 0, 1, 1], [], []>, precision = #tpu.contract_precision<fp32>} : vector<32x16xf32>, vector<16x8xf32>, vector<32x8xf32> -> vector<32x8xf32>
    %c0_27 = arith.constant 0 : index
    %c1_28 = arith.constant 1 : index
    %c0_29 = arith.constant 0 : index
    %c0_30 = arith.constant 0 : index
    %c0_31 = arith.constant 0 : index
    %19 = vector.load %arg4[%c0_27, %c1_28, %c0_29, %c0_30, %c0_31] : memref<1x2x2x32x8xf32, #tpu.memory_space<vmem>>, vector<1x1x1x32x8xf32>
    %20 = vector.shape_cast %19 : vector<1x1x1x32x8xf32> to vector<32x8xf32>
    %21 = vector.shape_cast %18 : vector<32x8xf32> to vector<1x1x1x32x8xf32>
    tpu.vector_store %arg4[%c0_27, %c1_28, %c0_29, %c0_30, %c0_31], %21 {strides = array<i32>} : memref<1x2x2x32x8xf32, #tpu.memory_space<vmem>>, vector<1x1x1x32x8xf32>,
    %c1_32 = arith.constant 1 : index
    %c0_33 = arith.constant 0 : index
    %c0_34 = arith.constant 0 : index
    %22 = vector.load %arg2[%c1_32, %c0_33, %c0_34] : memref<2x16x8xf32, #tpu.memory_space<vmem>>, vector<1x16x8xf32>
    %23 = vector.shape_cast %22 : vector<1x16x8xf32> to vector<16x8xf32>
    %cst_35 = arith.constant dense<0.000000e+00> : vector<32x8xf32>
    %24 = tpu.matmul %15, %23, %cst_35 {dimension_numbers = #tpu.dot_dimension_numbers<[1], [0], [0], [1], [0, 0, 1, 1], [], []>, precision = #tpu.contract_precision<fp32>} : vector<32x16xf32>, vector<16x8xf32>, vector<32x8xf32> -> vector<32x8xf32>
    %c0_36 = arith.constant 0 : index
    %c1_37 = arith.constant 1 : index
    %c1_38 = arith.constant 1 : index
    %c0_39 = arith.constant 0 : index
    %c0_40 = arith.constant 0 : index
    %25 = vector.load %arg4[%c0_36, %c1_37, %c1_38, %c0_39, %c0_40] : memref<1x2x2x32x8xf32, #tpu.memory_space<vmem>>, vector<1x1x1x32x8xf32>
    %26 = vector.shape_cast %25 : vector<1x1x1x32x8xf32> to vector<32x8xf32>
    %27 = vector.shape_cast %24 : vector<32x8xf32> to vector<1x1x1x32x8xf32>
    tpu.vector_store %arg4[%c0_36, %c1_37, %c1_38, %c0_39, %c0_40], %27 {strides = array<i32>} : memref<1x2x2x32x8xf32, #tpu.memory_space<vmem>>, vector<1x1x1x32x8xf32>,
    return
  }
  func.func @transform_0(%arg0: i32, %arg1: i32) -> (i32, i32, i32) {
    %c0_i32 = arith.constant 0 : i32
    %c0_i32_0 = arith.constant 0 : i32
    %c0_i32_1 = arith.constant 0 : i32
    %c0_i32_2 = arith.constant 0 : i32
    return %c0_i32, %c0_i32_0, %c0_i32_1 : i32, i32, i32
  }
  func.func @transform_1(%arg0: i32, %arg1: i32) -> (i32, i32, i32, i32) {
    %c0_i32 = arith.constant 0 : i32
    %c0_i32_0 = arith.constant 0 : i32
    %c0_i32_1 = arith.constant 0 : i32
    return %arg0, %arg1, %c0_i32, %c0_i32_0 : i32, i32, i32, i32
  }
  func.func @transform_2(%arg0: i32, %arg1: i32) -> (i32, i32, i32, i32, i32) {
    %c0_i32 = arith.constant 0 : i32
    %c0_i32_0 = arith.constant 0 : i32
    %c0_i32_1 = arith.constant 0 : i32
    %c0_i32_2 = arith.constant 0 : i32
    return %arg0, %c0_i32, %c0_i32_0, %arg1, %c0_i32_1 : i32, i32, i32, i32, i32
  }
}

</mosaic_0001>

<bundles_post_ra>
// kernel: psi_forward.1
= control target key start
LH: loop header
LB: loop body
LE: loop exit
PB: predicated region body
PF: predicated region fallthrough
CT: control target
= control target key end

     0   :  { %7 = vsyncpa [#allocation3], 0  ;;  %s4207_s0 = inlined_call_operand.vmem [shape: f32[2,16,8], index: 0, kind: input, shape index: {}]   ;;  %s4208_s1 = inlined_call_operand.hbm [shape: f32[2,32,2,16], index: 1, kind: input, shape index: {}]   ;;  %s4209_s2 = inlined_call_operand.vmem [shape: f32[2,2,2,32,8], index: 2, kind: output, shape index: {}]  }
   0x1   :  { %9 = vsyncpa [#allocation3 + $0x1], 0  ;;  %s3680_s9 = smov 0   ;;  %s3682_s10 = smov 0  }
   0x2   :  { %s3684_s11 = smov 0   ;;  %s3686_s12 = smov 0  }
   0x3   :  { %s3688_s13 = smov 0   ;;  %s3690_s14 = smov 0  }
   0x4 LB: > { %s2932_s15 = sadd.s32 4294967295, %s3660_s14   ;;  %s27_s16 = sadd.s32 1, %s3656_s13  ;;  %s3660_s14 = sphi %s3690_s14, %s15_s14   ;;  %s3656_s13 = sphi %s3688_s13, %s4217_s13   ;;  %s3652_s12 = sphi %s3686_s12, %s4216_s12   ;;  %s3648_s11 = sphi %s3684_s11, %s4215_s11   ;;  %s3644_s10 = sphi %s3682_s10, %s4214_s10   ;;  %s3640_s9 = sphi %s3680_s9, %s4213_s9  }
   0x5   : > { %p29_p0 = scmp.ge.s32.totalorder %s27_s16, 2  ;;  %s57_s17 = sadd.s32 1, %s3648_s11 }
   0x6   : > { %p64_p1 = scmp.ne.s32.totalorder %s3648_s11, %s3644_s10  ;;  %p65_p2 = scmp.eq.s32.totalorder %s3660_s14, 0 }
   0x7   : > { %s4219_s16 = smov (%p29_p0, %s27_s16), 0  ;;  %p70_p4 = scmp.ne.s32.totalorder %s3644_s10, %s3640_s9 }
   0x8   : > { %p3716_p3 = por %p65_p2, %p64_p1  ;;  %s52_s19 = ssub.s32 %s3656_s13, %s4219_s16 }
   0x9   : > { %p71_p5 = scmp.eq.s32.totalorder %s2932_s15, 0  ;;  %p55_p6 = scmp.eq.s32.totalorder %s52_s19, 0 }
   0xa   : > { %p3529_p8 = scmp.lt.s32.totalorder %s3660_s14, 2  ;;  %s125_s22 = sand.u32 1, %s3648_s11  }
   0xb   : > { %p3723_p7 = por %p71_p5, %p70_p4  ;;  %s2961_s23 = sshll.u32 %s3656_s13, 10 }
   0xc   : > { %s3729_s21 = scalar_select %p55_p6, %s3648_s11, %s57_s17  }
   0xd   : > { %s2936_s24 = sshll.u32 %s125_s22, 6  ;;  %s3736_s27 = scalar_lea.hbm %s4208_s1, %s2961_s23 }
   0xe   : > { %s129_s28 = scalar_lea.vmem [#allocation2], %s2936_s24  ;;  %p3740_p9 = pnand %p3529_p8, %p3716_p3 }
   0xf   : > { %s138_s29 = sshll.u32 %s129_s28, 4  ;;  %s3746_s3 = scalar_lea.sflag [#allocation3], %s125_s22  ;;  %s3744_s29 = int_to_ptr.vmem [resolvable:$true] %s138_s29 }
  0x10   : > { %s3580_s4 = scalar_lea.hbm %s3736_s27, 1024  ;;  %p3582_p11 = pneg %p3740_p9 }
  0x11   : > { %p3581_p10 = scmp.ne.s32.totalorder %s3736_s27, %s3580_s4  ;;  %s3585_s7 = scalar_lea.hbm %s4208_s1, 2048 }
  0x12   : > { %p3586_p0 = scmp.lt.u32.totalorder %s3736_s27, %s4208_s1  ;;  %p3587_p1 = scmp.lt.u32.totalorder %s3585_s7, %s3580_s4 }
  0x13   : > { %p3583_p12 = pnand %p3582_p11, %p3581_p10  ;;  %p3589_p3 = scmp.lt.u32.totalorder %s3580_s4, %s3736_s27 }
  0x14   : > { %p3588_p2 = por %p3587_p1, %p3586_p0 }
  0x15   : > { %p3584_p13 = pneg %p3583_p12 }
  0x16   : > { %p3590_p4 = por %p3589_p3, %p3588_p2 }
  0x18   : > { %p3591_p5 = pnand %p3590_p4, %p3584_p13 }
  0x1a   : > { %3594 = shalt.err (!%p3591_p5)
}
  0x1b   : > { %s3595_s15 = scalar_lea.vmem %s3744_s29, 1024  ;;  %s3662_s17 = smov [#allocation2]  }
  0x1c   : > { %p3596_p6 = scmp.ne.s32.totalorder %s3744_s29, %s3595_s15  ;;  %s3600_s18 = sshll.u32 %s3662_s17, 4  ;;  %s3601_s18 = int_to_ptr.vmem [resolvable:$false] %s3600_s18 }
  0x1d   : > { %s3602_s19 = scalar_lea.vmem %s3601_s18, 2048  ;;  %p3603_p12 = scmp.lt.s32.totalorder %s3744_s29, %s3601_s18 }
  0x1e   : > { %p3598_p8 = pnand %p3596_p6, %p3582_p11  ;;  %p3604_p0 = scmp.lt.s32.totalorder %s3602_s19, %s3595_s15 }
  0x20   : > { %p3599_p10 = pneg %p3598_p8  ;;  %p3605_p1 = por %p3604_p0, %p3603_p12 }
  0x22   : > { %p3606_p2 = pnand %p3605_p1, %p3599_p10 }
  0x24   : > { %3609 = shalt.err (!%p3606_p2)
}
  0x25   : > { %s3663_s22 = smov 32   ;;  %s3664_s23 = smov 2  }
  0x26   : > { %3528 = dma.hbm_to_vmem [thread:$0]  (!%p3740_p9), %s3736_s27, 1024, %s3744_s29, %s3746_s3, %s3663_s22, %s3663_s22, %s3664_s23  }
  0x27   : > { %p2939_p11 = scmp.ge.s32.totalorder %s3660_s14, 1  ;;  %p146_p13 = scmp.lt.s32.totalorder %s3660_s14, 3 }
  0x29   : > { %p147_p3 = pnand %p2939_p11, %p146_p13 }
  0x2a   : > { %s152_s24 = sand.u32 (!%p147_p3), 1, %s3644_s10  }
  0x2b   : > { %150 = sbr.rel (%p147_p3) target bundleno = 392 (0x188), region = 28  ;;  %s2940_s25 = sshll.u32 (!%p147_p3), %s152_s24, 6 }
  0x2c   : > { %s153_s26 = scalar_lea.sflag (!%p147_p3), [#allocation3], %s152_s24  ;;  %s3777_s28 = scalar_lea.vmem (!%p147_p3), [#allocation2], %s2940_s25 }
  0x32   : > { %3635 = dma.done.wait (%p3723_p7), %s153_s26, 1024  }
  0x33   : > { %3637 = vsyncadd (%p3723_p7), %s153_s26, 4294966272  ;;  %vm259_vm0 = vcmask 1041409   ;;  %vm262_vm1 = vcmask 1042434   ;;  %vm265_vm2 = vcmask 1043459   ;;  %v224_v0 = vld [vmem:[%s4207_s0] sm:$0xff]  ;;  %v225_v1 = vld [vmem:[%s4207_s0 + $0x8] sm:$0xff] }
  0x34   : > { %v2943_v2 = vld [vmem:[%s4207_s0 + $0x10] sm:$0xff]  ;;  %vm268_vm3 = vcmask 1044484   ;;  %vm271_vm4 = vcmask 1045509   ;;  %vm274_vm5 = vcmask 1046534   ;;  %v331_v3 = vand.u32 4294901760, %v224_v0  ;;  %v2944_v5 = vld [vmem:[%s4207_s0 + $0x18] sm:$0xff] }
  0x35   : > { %v334_v4 = vand.u32 4294901760, %v225_v1  ;;  %v927_v6 = vand.u32 4294901760, %v2943_v2  ;;  %v192_v7 = vld [vmem:[%s3777_s28] sm:$0x1]  ;;  %vm277_vm6 = vcmask 1047559   ;;  %v930_v8 = vand.u32 4294901760, %v2944_v5 }
  0x36   : > { %v193_v9 = vld [vmem:[%s3777_s28 + $0x2] sm:$0x1]  ;;  %v194_v10 = vld [vmem:[%s3777_s28 + $0x4] sm:$0x1]  ;;  %vm321_vm7 = vcmask 130048   ;;  %v3803_v15 = vsub.f32 %v224_v0, %v331_v3  ;;  %p183_p7 = scmp.lt.s32.totalorder %s3652_s12, 1 }
  0x37   : > { %v3798_v11 = vpack.c.bf16 %v334_v4, %v331_v3  ;;  %v195_v12 = vld [vmem:[%s3777_s28 + $0x6] sm:$0x1]  ;;  %v196_v13 = vld [vmem:[%s3777_s28 + $0x8] sm:$0x1]  ;;  %v197_v14 = vld [vmem:[%s3777_s28 + $0xa] sm:$0x1]  ;;  %v3805_v16 = vsub.f32 %v225_v1, %v334_v4  ;;  %v3807_v17 = vsub.f32 %v2943_v2, %v927_v6  ;;  %v3809_v18 = vpack.c.bf16 %v930_v8, %v927_v6 }
  0x38   : > { %v198_v19 = vld [vmem:[%s3777_s28 + $0xc] sm:$0x1]  ;;  %v199_v20 = vld [vmem:[%s3777_s28 + $0xe] sm:$0x1]  ;;  %v258_v21 = vrot.slane %v193_v9, 7  ;;  %v261_v22 = vrot.slane %v194_v10, 6  ;;  %v3813_v23 = vsub.f32 %v2944_v5, %v930_v8 }
  0x39   : > { %3348 = vmatprep.subr.bf16.mxu0 %v3798_v11  ;;  %v264_v24 = vrot.slane %v195_v12, 5  ;;  %v267_v25 = vrot.slane %v196_v13, 4  ;;  %v270_v26 = vrot.slane %v197_v14, 3  ;;  %v273_v27 = vrot.slane %v198_v19, 2  ;;  %3372 = vmatprep.subr.bf16.mxu1 %v3809_v18  ;;  %v200_v31 = vld [vmem:[%s3777_s28 + $0x10] sm:$0x1] }
  0x3a   : > { %3350 = vmatpush3.bf16.msra.mxu0 %v3798_v11  ;;  %v260_v28 = vsel %vm259_vm0, %v258_v21, %v192_v7  ;;  %v440_v29 = vand.u32 4294901760, %v3803_v15  ;;  %v447_v30 = vand.u32 4294901760, %v3805_v16  ;;  %v201_v32 = vld [vmem:[%s3777_s28 + $0x12] sm:$0x1]  ;;  %3374 = vmatpush3.bf16.msra.mxu1 %v3809_v18  ;;  %v276_v34 = vrot.slane %v199_v20, 1  ;;  %s4221_s12 = smov (!%p183_p7, %s3652_s12), 1 }
  0x3b   : > { %v263_v33 = vsel %vm262_vm1, %v261_v22, %v260_v28  ;;  %v1036_v35 = vand.u32 4294901760, %v3807_v17  ;;  %v1043_v36 = vand.u32 4294901760, %v3813_v23  ;;  %v202_v37 = vld [vmem:[%s3777_s28 + $0x14] sm:$0x1]  ;;  %v203_v41 = vld [vmem:[%s3777_s28 + $0x16] sm:$0x1] }
  0x3c   : > { %v266_v38 = vsel %vm265_vm2, %v264_v24, %v263_v33  ;;  %v441_v39 = vsub.f32 %v3803_v15, %v440_v29  ;;  %v448_v40 = vsub.f32 %v3805_v16, %v447_v30  ;;  %v204_v42 = vld [vmem:[%s3777_s28 + $0x18] sm:$0x1]  ;;  %v205_v43 = vld [vmem:[%s3777_s28 + $0x1a] sm:$0x1]  ;;  %v206_v47 = vld [vmem:[%s3777_s28 + $0x1c] sm:$0x1] }
  0x3d   : > { %v269_v44 = vsel %vm268_vm3, %v267_v25, %v266_v38  ;;  %v1037_v45 = vsub.f32 %v3807_v17, %v1036_v35  ;;  %v1044_v46 = vsub.f32 %v3813_v23, %v1043_v36  ;;  %v207_v48 = vld [vmem:[%s3777_s28 + $0x1e] sm:$0x1]  ;;  %v279_v49 = vrot.slane %v201_v32, 7  ;;  %v209_v54 = vld [vmem:[%s3777_s28 + $0x22] sm:$0x1]  ;;  %s2962_s7 = sshll.u32 %s4221_s12, 7 }
  0x3e   : > { %v272_v50 = vsel %vm271_vm4, %v270_v26, %v269_v44  ;;  %v442_v51 = vand.u32 4294901760, %v441_v39  ;;  %v449_v52 = vand.u32 4294901760, %v448_v40  ;;  %v281_v53 = vrot.slane %v202_v37, 6  ;;  %v210_v59 = vld [vmem:[%s3777_s28 + $0x24] sm:$0x1]  ;;  %s4155_s15 = scalar_lea.vmem %s4209_s2, %s2962_s7 }
  0x3f   : > { %v275_v55 = vsel %vm274_vm5, %v273_v27, %v272_v50  ;;  %v1038_v56 = vand.u32 4294901760, %v1037_v45  ;;  %v1045_v57 = vand.u32 4294901760, %v1044_v46  ;;  %v280_v58 = vsel %vm259_vm0, %v279_v49, %v200_v31  ;;  %v211_v60 = vld [vmem:[%s3777_s28 + $0x26] sm:$0x1]  ;;  %v208_v1 = vld [vmem:[%s3777_s28 + $0x20] sm:$0x1] }
  0x40   : > { %v278_v61 = vsel %vm277_vm6, %v276_v34, %v275_v55  ;;  %v3854_v62 = vpack.c.bf16 %v449_v52, %v442_v51  ;;  %v282_v63 = vsel %vm262_vm1, %v281_v53, %v280_v58  ;;  %v283_v0 = vrot.slane %v203_v41, 5  ;;  %v212_v2 = vld [vmem:[%s3777_s28 + $0x28] sm:$0x1]  ;;  %v213_v3 = vld [vmem:[%s3777_s28 + $0x2a] sm:$0x1] }
  0x41   : > { %v322_v4 = vsel %vm321_vm7, %v278_v61, 0  ;;  %v3861_v5 = vpack.c.bf16 %v1045_v57, %v1038_v56  ;;  %v285_v6 = vrot.slane %v204_v42, 4  ;;  %v287_v7 = vrot.slane %v205_v43, 3  ;;  %v214_v8 = vld [vmem:[%s3777_s28 + $0x2c] sm:$0x1] }
  0x42   : > { %v3864_v9 = vand.u32 4294901760, %v322_v4  ;;  %3352 = vmatprep.subr.bf16.mxu0 %v3854_v62  ;;  %v284_v10 = vsel %vm265_vm2, %v283_v0, %v282_v63  ;;  %v289_v12 = vrot.slane %v206_v47, 2  ;;  %v291_v13 = vrot.slane %v207_v48, 1  ;;  %v215_v14 = vld [vmem:[%s3777_s28 + $0x2e] sm:$0x1] }
  0x43   : > { %3376 = vmatprep.subr.bf16.mxu1 %v3861_v5  ;;  %v286_v19 = vsel %vm268_vm3, %v285_v6, %v284_v10  ;;  %v293_v20 = vrot.slane %v209_v54, 7  ;;  %v295_v21 = vrot.slane %v210_v59, 6  ;;  %v297_v22 = vrot.slane %v211_v60, 5  ;;  %v217_v28 = vld [vmem:[%s3777_s28 + $0x32] sm:$0x1] }
  0x44   : > { %v3872_v24 = vsub.f32 %v322_v4, %v3864_v9  ;;  %v288_v25 = vsel %vm271_vm4, %v287_v7, %v286_v19  ;;  %v299_v26 = vrot.slane %v212_v2, 4  ;;  %v301_v27 = vrot.slane %v213_v3, 3  ;;  %v218_v31 = vld [vmem:[%s3777_s28 + $0x34] sm:$0x1]  ;;  %v216_v38 = vld [vmem:[%s3777_s28 + $0x30] sm:$0x1] }
  0x45   : > { %v290_v32 = vsel %vm274_vm5, %v289_v12, %v288_v25  ;;  %v294_v33 = vsel %vm259_vm0, %v293_v20, %v208_v1  ;;  %v303_v34 = vrot.slane %v214_v8, 2  ;;  %v305_v37 = vrot.slane %v215_v14, 1  ;;  %v219_v39 = vld [vmem:[%s3777_s28 + $0x36] sm:$0x1]  ;;  %v220_v43 = vld [vmem:[%s3777_s28 + $0x38] sm:$0x1] }
  0x46   : > { %v3882_v40 = vand.u32 4294901760, %v3872_v24  ;;  %v292_v41 = vsel %vm277_vm6, %v291_v13, %v290_v32  ;;  %v296_v42 = vsel %vm262_vm1, %v295_v21, %v294_v33  ;;  %v221_v44 = vld [vmem:[%s3777_s28 + $0x3a] sm:$0x1]  ;;  %v307_v45 = vrot.slane %v217_v28, 7  ;;  %v222_v53 = vld [vmem:[%s3777_s28 + $0x3c] sm:$0x1] }
  0x47   : > { %v324_v46 = vsel %vm321_vm7, %v292_v41, 0  ;;  %v298_v47 = vsel %vm265_vm2, %v297_v22, %v296_v42  ;;  %v309_v48 = vrot.slane %v218_v31, 6  ;;  %v311_v49 = vrot.slane %v219_v39, 5  ;;  %v223_v54 = vld [vmem:[%s3777_s28 + $0x3e] sm:$0x1] }
  0x48   : > { %v400_v50 = vsub.f32 %v3872_v24, %v3882_v40  ;;  %v3892_v51 = vand.u32 4294901760, %v324_v46  ;;  %v300_v52 = vsel %vm268_vm3, %v299_v26, %v298_v47  ;;  %v308_v55 = vsel %vm259_vm0, %v307_v45, %v216_v38  ;;  %v1521_v33 = vld [vmem:[%s3777_s28 + $0x5] sm:$0x1]  ;;  %v1519_v39 = vld [vmem:[%s3777_s28 + $0x1] sm:$0x1] }
  0x49   : > { %v302_v56 = vsel %vm271_vm4, %v301_v27, %v300_v52  ;;  %v310_v57 = vsel %vm262_vm1, %v309_v48, %v308_v55  ;;  %v313_v58 = vrot.slane %v220_v43, 4  ;;  %v315_v59 = vrot.slane %v221_v44, 3  ;;  %v1520_v27 = vld [vmem:[%s3777_s28 + $0x3] sm:$0x1]  ;;  %v1522_v44 = vld [vmem:[%s3777_s28 + $0x7] sm:$0x1] }
  0x4a   : > { %v401_v60 = vand.u32 4294901760, %v400_v50  ;;  %v3901_v61 = vsub.f32 %v324_v46, %v3892_v51  ;;  %v304_v63 = vsel %vm274_vm5, %v303_v34, %v302_v56  ;;  %v312_v0 = vsel %vm265_vm2, %v311_v49, %v310_v57  ;;  %v1536_v42 = vld [vmem:[%s3777_s28 + $0x23] sm:$0x1]  ;;  %v1529_v46 = vld [vmem:[%s3777_s28 + $0x15] sm:$0x1] }
  0x4b   : > { %v306_v1 = vsel %vm277_vm6, %v305_v37, %v304_v63  ;;  %v314_v2 = vsel %vm268_vm3, %v313_v58, %v312_v0  ;;  %v317_v3 = vrot.slane %v222_v53, 2  ;;  %v319_v4 = vrot.slane %v223_v54, 1  ;;  %v1528_v37 = vld [vmem:[%s3777_s28 + $0x13] sm:$0x1]  ;;  %v1523_v48 = vld [vmem:[%s3777_s28 + $0x9] sm:$0x1] }
  0x4c   : > { %3111 = vmatprep.mubr.f32.mxu0 %v401_v60  ;;  %3171 = vmatprep.mubr.f32.mxu1 %v401_v60  ;;  %v3908_v6 = vand.u32 4294901760, %v3901_v61  ;;  %v326_v7 = vsel %vm321_vm7, %v306_v1, 0  ;;  %v316_v8 = vsel %vm271_vm4, %v315_v59, %v314_v2  ;;  %v3926_v25 = vpack.c.bf16 %v3805_v16, %v3803_v15  ;;  %v1527_v50 = vld [vmem:[%s3777_s28 + $0x11] sm:$0x1]  ;;  %v1537_v53 = vld [vmem:[%s3777_s28 + $0x25] sm:$0x1] }
  0x4d   : > { %v3912_v10 = vand.u32 4294901760, %v326_v7  ;;  %v318_v12 = vsel %vm274_vm5, %v317_v3, %v316_v8  ;;  %v3930_v26 = vpack.c.bf16 %v3813_v23, %v3807_v17  ;;  %v1585_v34 = vrot.slane %v1520_v27, 7  ;;  %v1544_v55 = vld [vmem:[%s3777_s28 + $0x33] sm:$0x1]  ;;  %v1530_v57 = vld [vmem:[%s3777_s28 + $0x17] sm:$0x1] }
  0x4e   : > { %v410_v13 = vsub.f32 %v3901_v61, %v3908_v6  ;;  %v320_v14 = vsel %vm277_vm6, %v319_v4, %v318_v12  ;;  %v1587_v45 = vrot.slane %v1521_v33, 6  ;;  %v1599_v47 = vrot.slane %v1528_v37, 7  ;;  %v1535_v59 = vld [vmem:[%s3777_s28 + $0x21] sm:$0x1]  ;;  %v1545_v0 = vld [vmem:[%s3777_s28 + $0x35] sm:$0x1] }
  0x4f   : > { %v3919_v19 = vsub.f32 %v326_v7, %v3912_v10  ;;  %v328_v20 = vsel %vm321_vm7, %v320_v14, 0  ;;  %v1586_v49 = vsel %vm259_vm0, %v1585_v34, %v1519_v39  ;;  %v1613_v54 = vrot.slane %v1536_v42, 7  ;;  %v1538_v1 = vld [vmem:[%s3777_s28 + $0x27] sm:$0x1]  ;;  %v1543_v3 = vld [vmem:[%s3777_s28 + $0x31] sm:$0x1] }
  0x50   : > { %v411_v21 = vand.u32 4294901760, %v410_v13  ;;  %v3922_v22 = vand.u32 4294901760, %v328_v20  ;;  %v1589_v56 = vrot.slane %v1522_v44, 5  ;;  %v1601_v58 = vrot.slane %v1529_v46, 6  ;;  %v1524_v7 = vld [vmem:[%s3777_s28 + $0xb] sm:$0x1] }
  0x51   : > { %v3934_v28 = vand.u32 4294901760, %v3919_v19  ;;  %v1588_v60 = vsel %vm262_vm1, %v1587_v45, %v1586_v49  ;;  %v1600_v63 = vsel %vm259_vm0, %v1599_v47, %v1527_v50  ;;  %v1615_v2 = vrot.slane %v1537_v53, 6  ;;  %v1531_v12 = vld [vmem:[%s3777_s28 + $0x19] sm:$0x1]  ;;  %v1546_v27 = vld [vmem:[%s3777_s28 + $0x37] sm:$0x1] }
  0x52   : > { %3112 = vmatmul.mubr.f32.vlgmr.msra.gmra.mrb[0].mxu0 %v411_v21  ;;  %3172 = vmatmul.mubr.f32.vlgmr.msra.gmra.mrb[0].mxu1 %v411_v21  ;;  %v3937_v31 = vsub.f32 %v328_v20, %v3922_v22  ;;  %v1627_v4 = vrot.slane %v1544_v55, 7  ;;  %v1591_v8 = vrot.slane %v1523_v48, 4  ;;  %v1603_v13 = vrot.slane %v1530_v57, 5  ;;  %v1539_v33 = vld [vmem:[%s3777_s28 + $0x29] sm:$0x1] }
  0x53   : > { %3354 = vmatpush3.bf16.msra.mxu0 %v3854_v62  ;;  %3378 = vmatpush3.bf16.msra.mxu1 %v3861_v5  ;;  %v420_v32 = vsub.f32 %v3919_v19, %v3934_v28  ;;  %v1614_v14 = vsel %vm259_vm0, %v1613_v54, %v1535_v59  ;;  %v1590_v20 = vsel %vm265_vm2, %v1589_v56, %v1588_v60  ;;  %v1617_v34 = vrot.slane %v1538_v1, 5  ;;  %v1525_v39 = vld [vmem:[%s3777_s28 + $0xd] sm:$0x1]  ;;  %v1532_v42 = vld [vmem:[%s3777_s28 + $0x1b] sm:$0x1] }
  0x54   : > { %v3946_v38 = vand.u32 4294901760, %v3937_v31  ;;  %3356 = vmatprep.subr.bf16.mxu0 %v3926_v25  ;;  %3380 = vmatprep.subr.bf16.mxu1 %v3930_v26  ;;  %v1602_v21 = vsel %vm262_vm1, %v1601_v58, %v1600_v63  ;;  %v1628_v37 = vsel %vm259_vm0, %v1627_v4, %v1543_v3  ;;  %v1616_v44 = vsel %vm262_vm1, %v1615_v2, %v1614_v14  ;;  %v1547_v47 = vld [vmem:[%s3777_s28 + $0x39] sm:$0x1]  ;;  %v1540_v49 = vld [vmem:[%s3777_s28 + $0x2b] sm:$0x1] }
  0x55   : > { %v421_v41 = vand.u32 4294901760, %v420_v32  ;;  %v1629_v32 = vrot.slane %v1545_v0, 6  ;;  %v1592_v45 = vsel %vm268_vm3, %v1591_v8, %v1590_v20  ;;  %v1604_v46 = vsel %vm265_vm2, %v1603_v13, %v1602_v21  ;;  %v1526_v53 = vld [vmem:[%s3777_s28 + $0xf] sm:$0x1]  ;;  %v1533_v55 = vld [vmem:[%s3777_s28 + $0x1d] sm:$0x1] }
  0x56   : > { %v430_v43 = vsub.f32 %v3937_v31, %v3946_v38  ;;  %v1631_v48 = vrot.slane %v1546_v27, 5  ;;  %v1619_v50 = vrot.slane %v1539_v33, 4  ;;  %v1595_v54 = vrot.slane %v1525_v39, 2  ;;  %v1548_v60 = vld [vmem:[%s3777_s28 + $0x3b] sm:$0x1] }
  0x57   : > { %3114 = vmatprep.mubr.f32.mxu0 %v421_v41  ;;  %3174 = vmatprep.mubr.f32.mxu1 %v421_v41  ;;  %v1593_v41 = vrot.slane %v1524_v7, 3  ;;  %v1607_v56 = vrot.slane %v1532_v42, 3  ;;  %v1618_v57 = vsel %vm265_vm2, %v1617_v34, %v1616_v44  ;;  %v1633_v63 = vrot.slane %v1547_v47, 4  ;;  %v1541_v1 = vld [vmem:[%s3777_s28 + $0x2d] sm:$0x1] }
  0x58   : > { %v431_v52 = vand.u32 4294901760, %v430_v43  ;;  %v1605_v43 = vrot.slane %v1531_v12, 4  ;;  %v4008_v0 = vpack.c.bf16 %v447_v30, %v440_v29  ;;  %v1621_v2 = vrot.slane %v1540_v49, 3  ;;  %v1534_v7 = vld [vmem:[%s3777_s28 + $0x1f] sm:$0x1] }
  0x59   : > { %v1594_v58 = vsel %vm271_vm4, %v1593_v41, %v1592_v45  ;;  %v1597_v4 = vrot.slane %v1526_v53, 1  ;;  %v1609_v8 = vrot.slane %v1533_v55, 2  ;;  %v1620_v15 = vsel %vm268_vm3, %v1619_v50, %v1618_v57  ;;  %v1549_v30 = vld [vmem:[%s3777_s28 + $0x3d] sm:$0x1]  ;;  %v1542_v23 = vld [vmem:[%s3777_s28 + $0x2f] sm:$0x1] }
  0x5a   : > { %3115 = vmatmul.mubr.f32.gmra.mrb[2].mxu0 %v431_v52  ;;  %3175 = vmatmul.mubr.f32.gmra.mrb[2].mxu1 %v431_v52  ;;  %v1630_v52 = vsel %vm262_vm1, %v1629_v32, %v1628_v37  ;;  %v1606_v59 = vsel %vm268_vm3, %v1605_v43, %v1604_v46  ;;  %v1596_v16 = vsel %vm274_vm5, %v1595_v54, %v1594_v58  ;;  %v1635_v17 = vrot.slane %v1548_v60, 3  ;;  %v1550_v20 = vld [vmem:[%s3777_s28 + $0x3f] sm:$0x1] }
  0x5b   : > { %3121 = vmatprep.mubr.f32.mxu0 %v3864_v9  ;;  %3181 = vmatprep.mubr.f32.mxu1 %v3864_v9  ;;  %v1632_v3 = vsel %vm265_vm2, %v1631_v48, %v1630_v52  ;;  %v1608_v29 = vsel %vm271_vm4, %v1607_v56, %v1606_v59  ;;  %v1622_v12 = vsel %vm271_vm4, %v1621_v2, %v1620_v15  ;;  %v1637_v21 = vrot.slane %v1549_v30, 2 }
  0x5c   : > { %v1598_v13 = vsel %vm277_vm6, %v1597_v4, %v1596_v16  ;;  %v1610_v14 = vsel %vm274_vm5, %v1609_v8, %v1608_v29  ;;  %v1625_v27 = vrot.slane %v1542_v23, 1  ;;  %v1639_v37 = vrot.slane %v1550_v20, 1 }
  0x5d   : > { %v1641_v33 = vsel %vm321_vm7, %v1598_v13, 0  ;;  %vm918_vm8 = vcmask 64512  }
  0x5e   : > { %3122 = vmatmul.mubr.f32.vlgmr.msra.gmra.mrb[0].mxu0 %v3892_v51  ;;  %3182 = vmatmul.mubr.f32.vlgmr.msra.gmra.mrb[0].mxu1 %v3892_v51 }
  0x5f   : > { %3358 = vmatpush3.bf16.msra.mxu0 %v3926_v25  ;;  %3382 = vmatpush3.bf16.msra.mxu1 %v3930_v26 }
  0x60   : > { %3124 = vmatprep.mubr.f32.mxu0 %v3912_v10  ;;  %3184 = vmatprep.mubr.f32.mxu1 %v3912_v10 }
  0x61   : > { %3360 = vmatprep.subr.bf16.mxu0 %v3798_v11  ;;  %3384 = vmatprep.subr.bf16.mxu1 %v3809_v18 }
  0x62   : > { %3125 = vmatmul.mubr.f32.gmra.mrb[2].mxu0 %v3922_v22  ;;  %3185 = vmatmul.mubr.f32.gmra.mrb[2].mxu1 %v3922_v22 }
  0x63   : > { %3131 = vmatprep.mubr.f32.mxu0 %v3872_v24  ;;  %3191 = vmatprep.mubr.f32.mxu1 %v3872_v24  ;;  %v4016_v24 = vpack.c.bf16 %v1043_v36, %v1036_v35  ;;  %v1623_v35 = vrot.slane %v1541_v1, 2  ;;  %v1634_v36 = vsel %vm268_vm3, %v1633_v63, %v1632_v3 }
  0x65   : > { %v1624_v32 = vsel %vm274_vm5, %v1623_v35, %v1622_v12 }
  0x66   : > { %3132 = vmatmul.mubr.f32.vlgmr.msra.gmra.mrb[0].mxu0 %v3901_v61  ;;  %3192 = vmatmul.mubr.f32.vlgmr.msra.gmra.mrb[0].mxu1 %v3901_v61  ;;  %v1611_v61 = vrot.slane %v1534_v7, 1 }
  0x67   : > { %3362 = vmatpush3.bf16.msra.mxu0 %v3798_v11  ;;  %3386 = vmatpush3.bf16.msra.mxu1 %v3809_v18 }
  0x68   : > { %3134 = vmatprep.mubr.f32.mxu0 %v3919_v19  ;;  %3194 = vmatprep.mubr.f32.mxu1 %v3919_v19  ;;  %v1636_v19 = vsel %vm271_vm4, %v1635_v17, %v1634_v36  ;;  %v1612_v34 = vsel %vm277_vm6, %v1611_v61, %v1610_v14 }
  0x69   : > { %3364 = vmatprep.subr.bf16.mxu0 %v4008_v0  ;;  %3388 = vmatprep.subr.bf16.mxu1 %v4016_v24  ;;  %v1638_v39 = vsel %vm274_vm5, %v1637_v21, %v1636_v19  ;;  %v1643_v41 = vsel %vm321_vm7, %v1612_v34, 0 }
  0x6a   : > { %3135 = vmatmul.mubr.f32.gmra.mrb[2].mxu0 %v3937_v31  ;;  %3195 = vmatmul.mubr.f32.gmra.mrb[2].mxu1 %v3937_v31  ;;  %v1626_v31 = vsel %vm277_vm6, %v1625_v27, %v1624_v32  ;;  %v1640_v42 = vsel %vm277_vm6, %v1639_v37, %v1638_v39  ;;  %v4062_v43 = vand.u32 4294901760, %v1643_v41 }
  0x6b   : > { %3141 = vmatprep.mubr.f32.mxu0 %v3882_v40  ;;  %3201 = vmatprep.mubr.f32.mxu1 %v3882_v40  ;;  %v4051_v40 = vand.u32 4294901760, %v1641_v33  ;;  %v1647_v44 = vsel %vm321_vm7, %v1640_v42, 0 }
  0x6c   : > { %v1727_v46 = vsub.f32 %v1643_v41, %v4062_v43 }
  0x6e   : > { %3142 = vmatmul.mubr.f32.vlgmr.msra.gmra.mrb[0].mxu0 %v3908_v6  ;;  %3202 = vmatmul.mubr.f32.vlgmr.msra.gmra.mrb[0].mxu1 %v3908_v6  ;;  %v1645_v6 = vsel %vm321_vm7, %v1626_v31, 0  ;;  %v1728_v49 = vand.u32 4294901760, %v1727_v46 }
  0x6f   : > { %3366 = vmatpush3.bf16.msra.mxu0 %v4008_v0  ;;  %3390 = vmatpush3.bf16.msra.mxu1 %v4016_v24  ;;  %v4070_v45 = vand.u32 4294901760, %v1645_v6 }
  0x70   : > { %3144 = vmatprep.mubr.f32.mxu0 %v3934_v28  ;;  %3204 = vmatprep.mubr.f32.mxu1 %v3934_v28  ;;  %v4067_v28 = vsub.f32 %v1641_v33, %v4051_v40  ;;  %v1729_v54 = vsub.f32 %v1727_v46, %v1728_v49 }
  0x71   : > { %3368 = vmatprep.subr.bf16.mxu0 %v3798_v11  ;;  %3392 = vmatprep.subr.bf16.mxu1 %v3809_v18  ;;  %v1737_v48 = vsub.f32 %v1645_v6, %v4070_v45 }
  0x72   : > { %3145 = vmatmul.mubr.f32.gmra.mrb[2].mxu0 %v3946_v38  ;;  %3205 = vmatmul.mubr.f32.gmra.mrb[2].mxu1 %v3946_v38  ;;  %v4075_v38 = vand.u32 4294901760, %v1647_v44  ;;  %v4080_v47 = vand.u32 4294901760, %v4067_v28 }
  0x73   : > { %3151 = vmatprep.mubr.f32.mxu0 %v3864_v9  ;;  %3211 = vmatprep.mubr.f32.mxu1 %v3864_v9  ;;  %v1738_v53 = vand.u32 4294901760, %v1737_v48 }
  0x74   : > { %v1747_v50 = vsub.f32 %v1647_v44, %v4075_v38  ;;  %v1719_v52 = vsub.f32 %v4067_v28, %v4080_v47 }
  0x76   : > { %3152 = vmatmul.mubr.f32.vlgmr.msra.gmra.mrb[0].mxu0 %v3892_v51  ;;  %3212 = vmatmul.mubr.f32.vlgmr.msra.gmra.mrb[0].mxu1 %v3892_v51  ;;  %v1748_v55 = vand.u32 4294901760, %v1747_v50  ;;  %v1720_v56 = vand.u32 4294901760, %v1719_v52 }
  0x77   : > { %3370 = vmatpush3.bf16.msra.mxu0 %v3798_v11  ;;  %3394 = vmatpush3.bf16.msra.mxu1 %v3809_v18 }
  0x78   : > { %3154 = vmatprep.mubr.f32.mxu0 %v3912_v10  ;;  %3214 = vmatprep.mubr.f32.mxu1 %v3912_v10  ;;  %v1749_v57 = vsub.f32 %v1747_v50, %v1748_v55 }
  0x79   : > { %3396 = vmatprep.subr.bf16.mxu0 %v3798_v11  ;;  %3420 = vmatprep.subr.bf16.mxu1 %v3809_v18 }
  0x7a   : > { %3155 = vmatmul.mubr.f32.gmra.mrb[2].mxu0 %v3922_v22  ;;  %3215 = vmatmul.mubr.f32.gmra.mrb[2].mxu1 %v3922_v22  ;;  %v1750_v59 = vand.u32 4294901760, %v1749_v57 }
  0x7b   : > { %3161 = vmatprep.mubr.f32.mxu0 %v3864_v9  ;;  %3221 = vmatprep.mubr.f32.mxu1 %v3864_v9  ;;  %v1739_v9 = vsub.f32 %v1737_v48, %v1738_v53 }
  0x7d   : > { %v1740_v58 = vand.u32 4294901760, %v1739_v9 }
  0x7e   : > { %3162 = vmatmul.mubr.f32.vlgmr.msra.gmra.mrb[0].mxu0 %v3892_v51  ;;  %3222 = vmatmul.mubr.f32.vlgmr.msra.gmra.mrb[0].mxu1 %v3892_v51  ;;  %v1730_v51 = vand.u32 4294901760, %v1729_v54 }
  0x7f   : > { %3398 = vmatpush3.bf16.msra.mxu0 %v3798_v11  ;;  %3422 = vmatpush3.bf16.msra.mxu1 %v3809_v18 }
  0x80   : > { %3164 = vmatprep.mubr.f32.mxu0 %v3912_v10  ;;  %3224 = vmatprep.mubr.f32.mxu1 %v3912_v10 }
  0x81   : > { %3400 = vmatprep.subr.bf16.mxu0 %v3854_v62  ;;  %3424 = vmatprep.subr.bf16.mxu1 %v3861_v5 }
  0x82   : > { %3165 = vmatmul.mubr.f32.gmra.mrb[2].mxu0 %v3922_v22  ;;  %3225 = vmatmul.mubr.f32.gmra.mrb[2].mxu1 %v3922_v22 }
  0x83   : > { %3231 = vmatprep.mubr.f32.mxu0 %v1720_v56  ;;  %3291 = vmatprep.mubr.f32.mxu1 %v1720_v56 }
  0x86   : > { %3232 = vmatmul.mubr.f32.vlgmr.msra.gmra.mrb[4].mxu0 %v1730_v51  ;;  %3292 = vmatmul.mubr.f32.vlgmr.msra.gmra.mrb[4].mxu1 %v1730_v51 }
  0x87   : > { %3402 = vmatpush3.bf16.msra.mxu0 %v3854_v62  ;;  %3426 = vmatpush3.bf16.msra.mxu1 %v3861_v5 }
  0x88   : > { %3234 = vmatprep.mubr.f32.mxu0 %v1740_v58  ;;  %3294 = vmatprep.mubr.f32.mxu1 %v1740_v58 }
  0x89   : > { %3404 = vmatprep.subr.bf16.mxu0 %v3926_v25  ;;  %3428 = vmatprep.subr.bf16.mxu1 %v3930_v26 }
  0x8a   : > { %3235 = vmatmul.mubr.f32.gmra.mrb[6].mxu0 %v1750_v59  ;;  %3295 = vmatmul.mubr.f32.gmra.mrb[6].mxu1 %v1750_v59 }
  0x8b   : > { %3241 = vmatprep.mubr.f32.mxu0 %v4051_v40  ;;  %3301 = vmatprep.mubr.f32.mxu1 %v4051_v40 }
  0x8e   : > { %3242 = vmatmul.mubr.f32.vlgmr.msra.gmra.mrb[4].mxu0 %v4062_v43  ;;  %3302 = vmatmul.mubr.f32.vlgmr.msra.gmra.mrb[4].mxu1 %v4062_v43 }
  0x8f   : > { %3406 = vmatpush3.bf16.msra.mxu0 %v3926_v25  ;;  %3430 = vmatpush3.bf16.msra.mxu1 %v3930_v26 }
  0x90   : > { %3244 = vmatprep.mubr.f32.mxu0 %v4070_v45  ;;  %3304 = vmatprep.mubr.f32.mxu1 %v4070_v45 }
  0x91   : > { %3408 = vmatprep.subr.bf16.mxu0 %v3798_v11  ;;  %3432 = vmatprep.subr.bf16.mxu1 %v3809_v18 }
  0x92   : > { %3245 = vmatmul.mubr.f32.gmra.mrb[6].mxu0 %v4075_v38  ;;  %3305 = vmatmul.mubr.f32.gmra.mrb[6].mxu1 %v4075_v38 }
  0x93   : > { %3251 = vmatprep.mubr.f32.mxu0 %v4067_v28  ;;  %3311 = vmatprep.mubr.f32.mxu1 %v4067_v28 }
  0x96   : > { %3252 = vmatmul.mubr.f32.vlgmr.msra.gmra.mrb[4].mxu0 %v1727_v46  ;;  %3312 = vmatmul.mubr.f32.vlgmr.msra.gmra.mrb[4].mxu1 %v1727_v46 }
  0x97   : > { %3410 = vmatpush3.bf16.msra.mxu0 %v3798_v11  ;;  %3434 = vmatpush3.bf16.msra.mxu1 %v3809_v18 }
  0x98   : > { %3254 = vmatprep.mubr.f32.mxu0 %v1737_v48  ;;  %3314 = vmatprep.mubr.f32.mxu1 %v1737_v48 }
  0x99   : > { %3412 = vmatprep.subr.bf16.mxu0 %v4008_v0  ;;  %3436 = vmatprep.subr.bf16.mxu1 %v4016_v24 }
  0x9a   : > { %3255 = vmatmul.mubr.f32.gmra.mrb[6].mxu0 %v1747_v50  ;;  %3315 = vmatmul.mubr.f32.gmra.mrb[6].mxu1 %v1747_v50 }
  0x9b   : > { %3261 = vmatprep.mubr.f32.mxu0 %v4080_v47  ;;  %3321 = vmatprep.mubr.f32.mxu1 %v4080_v47 }
  0x9e   : > { %3262 = vmatmul.mubr.f32.vlgmr.msra.gmra.mrb[4].mxu0 %v1728_v49  ;;  %3322 = vmatmul.mubr.f32.vlgmr.msra.gmra.mrb[4].mxu1 %v1728_v49 }
  0x9f   : > { %3414 = vmatpush3.bf16.msra.mxu0 %v4008_v0  ;;  %3438 = vmatpush3.bf16.msra.mxu1 %v4016_v24 }
  0xa0   : > { %3264 = vmatprep.mubr.f32.mxu0 %v1738_v53  ;;  %3324 = vmatprep.mubr.f32.mxu1 %v1738_v53 }
  0xa1   : > { %3416 = vmatprep.subr.bf16.mxu0 %v3798_v11  ;;  %3440 = vmatprep.subr.bf16.mxu1 %v3809_v18 }
  0xa2   : > { %3265 = vmatmul.mubr.f32.gmra.mrb[6].mxu0 %v1748_v55  ;;  %3325 = vmatmul.mubr.f32.gmra.mrb[6].mxu1 %v1748_v55 }
  0xa3   : > { %3271 = vmatprep.mubr.f32.mxu0 %v4051_v40  ;;  %3331 = vmatprep.mubr.f32.mxu1 %v4051_v40 }
  0xa6   : > { %3272 = vmatmul.mubr.f32.vlgmr.msra.gmra.mrb[4].mxu0 %v4062_v43  ;;  %3332 = vmatmul.mubr.f32.vlgmr.msra.gmra.mrb[4].mxu1 %v4062_v43 }
  0xa7   : > { %3418 = vmatpush3.bf16.msra.mxu0 %v3798_v11  ;;  %3442 = vmatpush3.bf16.msra.mxu1 %v3809_v18 }
  0xa8   : > { %3274 = vmatprep.mubr.f32.mxu0 %v4070_v45  ;;  %3334 = vmatprep.mubr.f32.mxu1 %v4070_v45 }
  0xaa   : > { %3275 = vmatmul.mubr.f32.gmra.mrb[6].mxu0 %v4075_v38  ;;  %3335 = vmatmul.mubr.f32.gmra.mrb[6].mxu1 %v4075_v38 }
  0xab   : > { %3281 = vmatprep.mubr.f32.mxu0 %v4051_v40  ;;  %3341 = vmatprep.mubr.f32.mxu1 %v4051_v40 }
  0xae   : > { %3282 = vmatmul.mubr.f32.vlgmr.msra.gmra.mrb[4].mxu0 %v4062_v43  ;;  %3342 = vmatmul.mubr.f32.vlgmr.msra.gmra.mrb[4].mxu1 %v4062_v43 }
  0xaf   : > { %3284 = vmatprep.mubr.f32.mxu0 %v4070_v45  ;;  %3344 = vmatprep.mubr.f32.mxu1 %v4070_v45 }
  0xb2   : > { %3285 = vmatmul.mubr.f32.gmra.mrb[6].mxu0 %v4075_v38  ;;  %3345 = vmatmul.mubr.f32.gmra.mrb[6].mxu1 %v4075_v38 }
 0x151   : > { %v3163_v11 = vpop.f32.mrb[0].mxu0  ;;  %v3223_v18 = vpop.f32.mrb[0].mxu1 }
 0x152   : > { %920 = vst.msk [vmem:[%s4155_s15 + $0x8] sm:$0xff] %vm918_vm8, %v3163_v11  ;;  %2946 = vst.msk [vmem:[%s4155_s15 + $0x28] sm:$0xff] %vm918_vm8, %v3223_v18  ;;  %v896_v62 = vpop.f32.mrb[1].mxu0  ;;  %v1492_v5 = vpop.f32.mrb[1].mxu1 }
 0x153   : > { %919 = vst.msk [vmem:[%s4155_s15] sm:$0xff] %vm918_vm8, %v896_v62  ;;  %2945 = vst.msk [vmem:[%s4155_s15 + $0x20] sm:$0xff] %vm918_vm8, %v1492_v5 }
 0x155   : > { %v3166_v10 = vpop.f32.mrb[2].mxu0  ;;  %v3226_v22 = vpop.f32.mrb[2].mxu1 }
 0x156   : > { %922 = vst.msk [vmem:[%s4155_s15 + $0x18] sm:$0xff] %vm918_vm8, %v3166_v10  ;;  %2948 = vst.msk [vmem:[%s4155_s15 + $0x38] sm:$0xff] %vm918_vm8, %v3226_v22  ;;  %v908_v25 = vpop.f32.mrb[3].mxu0  ;;  %v1504_v26 = vpop.f32.mrb[3].mxu1 }
 0x157   : > { %921 = vst.msk [vmem:[%s4155_s15 + $0x10] sm:$0xff] %vm918_vm8, %v908_v25  ;;  %2947 = vst.msk [vmem:[%s4155_s15 + $0x30] sm:$0xff] %vm918_vm8, %v1504_v26 }
 0x181   : > { %v3283_v60 = vpop.f32.mrb[4].mxu0  ;;  %v3343_v63 = vpop.f32.mrb[4].mxu1 }
 0x182   : > { %2950 = vst.msk [vmem:[%s4155_s15 + $0x48] sm:$0xff] %vm918_vm8, %v3283_v60  ;;  %2956 = vst.msk [vmem:[%s4155_s15 + $0x68] sm:$0xff] %vm918_vm8, %v3343_v63  ;;  %v2215_v0 = vpop.f32.mrb[5].mxu0  ;;  %v2810_v1 = vpop.f32.mrb[5].mxu1 }
 0x183   : > { %2949 = vst.msk [vmem:[%s4155_s15 + $0x40] sm:$0xff] %vm918_vm8, %v2215_v0  ;;  %2955 = vst.msk [vmem:[%s4155_s15 + $0x60] sm:$0xff] %vm918_vm8, %v2810_v1 }
 0x185   : > { %v3286_v2 = vpop.f32.mrb[6].mxu0  ;;  %v3346_v3 = vpop.f32.mrb[6].mxu1 }
 0x186   : > { %2952 = vst.msk [vmem:[%s4155_s15 + $0x58] sm:$0xff] %vm918_vm8, %v3286_v2  ;;  %2958 = vst.msk [vmem:[%s4155_s15 + $0x78] sm:$0xff] %vm918_vm8, %v3346_v3  ;;  %v2227_v24 = vpop.f32.mrb[7].mxu0  ;;  %v2822_v4 = vpop.f32.mrb[7].mxu1 }
 0x187   : > { %2951 = vst.msk [vmem:[%s4155_s15 + $0x50] sm:$0xff] %vm918_vm8, %v2227_v24  ;;  %2957 = vst.msk [vmem:[%s4155_s15 + $0x70] sm:$0xff] %vm918_vm8, %v2822_v4 }
 0x188 PF: > { %s15_s14 = sadd.s32 1, %s3660_s14   ;;  %s4213_s9 = smov %s3644_s10 }
 0x189   : > { %p12_p9 = scmp.ge.s32.totalorder %s15_s14, 4   ;;  %s4214_s10 = smov %s3648_s11 }
 0x18a   : > { %s4215_s11 = smov %s3729_s21  ;;  %s4216_s12 = smov %s3656_s13 }
 0x18b   : > { %s4217_s13 = smov %s4219_s16  ;;  %14 = sbr.rel (!%p12_p9) target bundleno = 4 (0x4), region = 72 }
 0x192   :  { %2867 = vsyncpa [#allocation3], 1 }
 0x193   :  { %2869 = vsyncpa [#allocation3 + $0x1], 1 }

</bundles_post_ra>
